<compile_context>
chip_gen: v7x
topology: tpu7x:2x2x1
jax: 0.10.0
libtpu: 0.0.40
codegen_flags: <defaults>
</compile_context>

<pallas_src>
import functools

import jax
import jax.numpy as jnp
from jax import lax
from jax.experimental import pallas as pl
from jax.experimental.pallas import tpu as pltpu


_VMEM_BUDGET = 24 * 1024 * 1024   # target working set (fits all chips' scoped VMEM)
_VMEM_LIMIT = 32 * 1024 * 1024    # explicit scoped-VMEM limit, safe on v5e/v6e/v7x


def _select_tk(M, K, itemsize):
    """Largest K-tile (multiple of 128 that divides K) whose double-buffered
    (M, tk) feature slab stays within the VMEM budget."""
    per_col = max(1, 2 * M * itemsize)          # double-buffered feature tile
    max_tk = max(128, _VMEM_BUDGET // per_col)
    if K <= max_tk:
        return K
    tk = min((max_tk // 128) * 128, (K // 128) * 128)
    while tk >= 128:
        if K % tk == 0:
            return tk
        tk -= 128
    return K  # no 128-multiple divisor of K: fall back to a single block


def _compiler_params():
    return pltpu.CompilerParams(
        dimension_semantics=("arbitrary",),     # K axis is a reduction
        vmem_limit_bytes=_VMEM_LIMIT,
    )


# ----------------------------------------------------------------------------
# Kernel 1 (only used for the target buffer in __init__):
#   G = (F @ F.T) / (b*h*w*f), K-tiled with resident f32 accumulator.
# ----------------------------------------------------------------------------
def _gram_kernel(f_ref, g_ref, acc_ref, *, inv_n):
    k = pl.program_id(0)

    @pl.when(k == 0)
    def _():
        acc_ref[...] = jnp.zeros_like(acc_ref)

    f = f_ref[...]                                   # (M, tk), native dtype
    acc_ref[...] += lax.dot_general(                 # contract shared K, no f.T
        f, f,
        dimension_numbers=(((1,), (1,)), ((), ())),
        preferred_element_type=jnp.float32)

    @pl.when(k == pl.num_programs(0) - 1)
    def _():
        g_ref[...] = acc_ref[...] * inv_n


def gram_matrix(x, *, tk=None):
    """x: (b, h, w, f) -> (b*h, b*h) float32 gram, normalized by b*h*w*f."""
    b, h, w, fm = x.shape
    M, K = b * h, w * fm
    feats = x.reshape(M, K)                          # keep native dtype
    inv_n = 1.0 / float(b * h * w * fm)
    if tk is None:
        tk = _select_tk(M, K, feats.dtype.itemsize)
    assert K % tk == 0
    nk = K // tk

    kernel = functools.partial(_gram_kernel, inv_n=inv_n)
    return pl.pallas_call(
        kernel,
        out_shape=jax.ShapeDtypeStruct((M, M), jnp.float32),
        grid=(nk,),
        in_specs=[pl.BlockSpec((M, tk), lambda k: (0, k))],
        out_specs=pl.BlockSpec((M, M), lambda k: (0, 0)),
        scratch_shapes=[pltpu.VMEM((M, M), jnp.float32)],
        compiler_params=_compiler_params(),
        cost_estimate=pl.CostEstimate(
            flops=2 * M * M * K,
            transcendentals=0,
            bytes_accessed=M * K * feats.dtype.itemsize + M * M * 4),
    )(feats)


# ----------------------------------------------------------------------------
# Kernel 2 (forward path): fused gram + MSE
#   loss = mean(((F @ F.T) / n - target)^2)
# G never leaves VMEM; the scalar loss is written straight to SMEM.
# ----------------------------------------------------------------------------
def _fused_style_loss_kernel(f_ref, t_ref, loss_ref, acc_ref, *, inv_n, inv_m2):
    k = pl.program_id(0)

    @pl.when(k == 0)
    def _():
        acc_ref[...] = jnp.zeros_like(acc_ref)

    f = f_ref[...]                                   # (M, tk), native dtype
    acc_ref[...] += lax.dot_general(
        f, f,
        dimension_numbers=(((1,), (1,)), ((), ())),
        preferred_element_type=jnp.float32)

    @pl.when(k == pl.num_programs(0) - 1)
    def _():
        g = acc_ref[...] * inv_n
        d = g - t_ref[...]
        loss_ref[0, 0] = jnp.sum(d * d) * inv_m2


def style_mse_loss(x, target, *, tk=None):
    """x: (b, h, w, f) features; target: (b*h, b*h) f32 gram -> f32 scalar."""
    b, h, w, fm = x.shape
    M, K = b * h, w * fm
    feats = x.reshape(M, K)
    inv_n = 1.0 / float(b * h * w * fm)
    inv_m2 = 1.0 / float(M * M)
    if tk is None:
        tk = _select_tk(M, K, feats.dtype.itemsize)
    assert K % tk == 0
    nk = K // tk

    kernel = functools.partial(_fused_style_loss_kernel, inv_n=inv_n, inv_m2=inv_m2)
    out = pl.pallas_call(
        kernel,
        out_shape=jax.ShapeDtypeStruct((1, 1), jnp.float32),
        grid=(nk,),
        in_specs=[
            pl.BlockSpec((M, tk), lambda k: (0, k)),   # feature K-tile (pipelined)
            pl.BlockSpec((M, M), lambda k: (0, 0)),    # target gram, resident
        ],
        out_specs=pl.BlockSpec(memory_space=pltpu.MemorySpace.SMEM),
        scratch_shapes=[pltpu.VMEM((M, M), jnp.float32)],
        compiler_params=_compiler_params(),
        cost_estimate=pl.CostEstimate(
            flops=2 * M * M * K + 3 * M * M,
            transcendentals=0,
            bytes_accessed=M * K * feats.dtype.itemsize + M * M * 4 + 4),
    )(feats, target.astype(jnp.float32))
    return out[0, 0]


# ----------------------------------------------------------------------------
# StyleLoss module (JAX/Pallas equivalent of the PyTorch nn.Module)
# ----------------------------------------------------------------------------
class StyleLoss:
    def __init__(self, target_feature):
        # Target gram is a fixed (detached) buffer.
        self.target = jax.lax.stop_gradient(gram_matrix(target_feature))
        # F.mse_loss(target, target) is identically zero -- no kernel launch.
        self.loss = jnp.float32(0.0)

    def __call__(self, input_v):
        return self.forward(input_v)

    def forward(self, input_v):
        # Gram + MSE fused into one kernel; G never round-trips through HBM.
        self.loss = style_mse_loss(input_v, self.target)
        return input_v  # identity on the activations, loss stored on self


# ----------------------------------------------------------------------------
# Reference (pure JAX) for correctness check
# ----------------------------------------------------------------------------
def _gram_ref(x):
    b, h, w, fm = x.shape
    f = x.reshape(b * h, w * fm).astype(jnp.float32)
    return (f @ f.T) / float(b * h * w * fm)


if __name__ == "__main__":
    key = jax.random.PRNGKey(0)
    k_tgt, k_in = jax.random.split(key)

    # (batch_size, h, w, f_map_num)
    shape = (2, 4, 16, 16)
    target_feature = jax.random.normal(k_tgt, shape, dtype=jnp.float32)
    input_v = jax.random.normal(k_in, shape, dtype=jnp.float32)

    module = StyleLoss(target_feature)
    out = module.forward(input_v)

    out = jax.block_until_ready(out)
    loss = jax.block_until_ready(module.loss)

    # pure-JAX reference
    G_ref = _gram_ref(input_v)
    T_ref = _gram_ref(target_feature)
    loss_ref = jnp.mean((G_ref - T_ref) ** 2)

    assert out.shape == input_v.shape
    assert jnp.allclose(out, input_v)
    assert jnp.allclose(module.target, T_ref, rtol=1e-4, atol=1e-5)
    assert jnp.allclose(loss, loss_ref, rtol=1e-5, atol=1e-5)

    # Explicitly exercise the multi-step K-tiled accumulation path (tk < K).
    loss_tiled = jax.block_until_ready(style_mse_loss(input_v, module.target, tk=128))
    gram_tiled = jax.block_until_ready(gram_matrix(target_feature, tk=128))
    assert jnp.allclose(loss_tiled, loss_ref, rtol=1e-5, atol=1e-5)
    assert jnp.allclose(gram_tiled, T_ref, rtol=1e-4, atol=1e-5)

    print("KERNEL_OK")
</pallas_src>

<mosaic_0001>
module attributes {stable_mosaic.version = 11 : i64} {
  func.func @_gram_kernel(%arg0: i32, %arg1: memref<8x256xf32, #tpu.memory_space<vmem>>, %arg2: memref<8x8xf32, #tpu.memory_space<vmem>>, %arg3: memref<8x8xf32, #tpu.memory_space<vmem>>) attributes {dimension_semantics = [#tpu.dimension_semantics<arbitrary>], iteration_bounds = array<i64: 1>, scalar_prefetch = 0 : i64, scratch_operands = 1 : i64, tpu.core_type = #tpu.core_type<tc>, window_params = [{transform_indices = @transform_0, window_bounds = array<i64: 8, 256>}, {pipeline_mode = #tpu.pipeline_mode<synchronous>, transform_indices = @transform_1, window_bounds = array<i64: 8, 8>}]} {
    %c0_i32 = arith.constant 0 : i32
    %0 = arith.cmpi eq, %arg0, %c0_i32 : i32
    %1 = arith.extui %0 : i1 to i32
    %c0_i32_0 = arith.constant 0 : i32
    %2 = arith.cmpi ne, %1, %c0_i32_0 : i32
    scf.if %2 {
      %cst_8 = arith.constant 0.000000e+00 : f32
      %11 = vector.broadcast %cst_8 : f32 to vector<8x8xf32>
      %c0_9 = arith.constant 0 : index
      %c0_10 = arith.constant 0 : index
      %12 = vector.load %arg3[%c0_9, %c0_10] : memref<8x8xf32, #tpu.memory_space<vmem>>, vector<8x8xf32>
      tpu.vector_store %arg3[%c0_9, %c0_10], %11 {strides = array<i32>} : memref<8x8xf32, #tpu.memory_space<vmem>>, vector<8x8xf32>,
    } else {
    }
    %c0 = arith.constant 0 : index
    %c0_1 = arith.constant 0 : index
    %3 = vector.load %arg1[%c0, %c0_1] : memref<8x256xf32, #tpu.memory_space<vmem>>, vector<8x256xf32>
    %c0_2 = arith.constant 0 : index
    %c0_3 = arith.constant 0 : index
    %4 = vector.load %arg3[%c0_2, %c0_3] : memref<8x8xf32, #tpu.memory_space<vmem>>, vector<8x8xf32>
    %cst = arith.constant dense<0.000000e+00> : vector<8x8xf32>
    %5 = tpu.matmul %3, %3, %cst {dimension_numbers = #tpu.dot_dimension_numbers<[1], [1], [0], [0], [0, 0, 1, 0], [], []>} : vector<8x256xf32>, vector<8x256xf32>, vector<8x8xf32> -> vector<8x8xf32>
    %6 = arith.addf %4, %5 : vector<8x8xf32>
    %c0_4 = arith.constant 0 : index
    %c0_5 = arith.constant 0 : index
    %7 = vector.load %arg3[%c0_4, %c0_5] : memref<8x8xf32, #tpu.memory_space<vmem>>, vector<8x8xf32>
    tpu.vector_store %arg3[%c0_4, %c0_5], %6 {strides = array<i32>} : memref<8x8xf32, #tpu.memory_space<vmem>>, vector<8x8xf32>,
    %c0_i32_6 = arith.constant 0 : i32
    %8 = arith.cmpi eq, %arg0, %c0_i32_6 : i32
    %9 = arith.extui %8 : i1 to i32
    %c0_i32_7 = arith.constant 0 : i32
    %10 = arith.cmpi ne, %9, %c0_i32_7 : i32
    scf.if %10 {
      %c0_8 = arith.constant 0 : index
      %c0_9 = arith.constant 0 : index
      %11 = vector.load %arg3[%c0_8, %c0_9] : memref<8x8xf32, #tpu.memory_space<vmem>>, vector<8x8xf32>
      %cst_10 = arith.constant 4.8828125E-4 : f32
      %12 = vector.broadcast %cst_10 : f32 to vector<8x8xf32>
      %13 = arith.mulf %11, %12 : vector<8x8xf32>
      %c0_11 = arith.constant 0 : index
      %c0_12 = arith.constant 0 : index
      %14 = vector.load %arg2[%c0_11, %c0_12] : memref<8x8xf32, #tpu.memory_space<vmem>>, vector<8x8xf32>
      tpu.vector_store %arg2[%c0_11, %c0_12], %13 {strides = array<i32>} : memref<8x8xf32, #tpu.memory_space<vmem>>, vector<8x8xf32>,
    } else {
    }
    return
  }
  func.func @transform_0(%arg0: i32) -> (i32, i32) {
    %c0_i32 = arith.constant 0 : i32
    %c0_i32_0 = arith.constant 0 : i32
    return %c0_i32, %arg0 : i32, i32
  }
  func.func @transform_1(%arg0: i32) -> (i32, i32) {
    %c0_i32 = arith.constant 0 : i32
    %c0_i32_0 = arith.constant 0 : i32
    %c0_i32_1 = arith.constant 0 : i32
    return %c0_i32, %c0_i32_0 : i32, i32
  }
}

</mosaic_0001>

<bundles_post_ra>
// kernel: tpu_custom_call.1
= control target key start
LH: loop header
LB: loop body
LE: loop exit
PB: predicated region body
PF: predicated region fallthrough
CT: control target
= control target key end

     0   :  { %6 = vsyncpa [#allocation4], 0  ;;  %s215_s0 = inlined_call_operand.hbm [shape: f32[8,256], index: 0, kind: input, shape index: {}]   ;;  %s216_s1 = inlined_call_operand.hbm [shape: f32[8,8], index: 1, kind: output, shape index: {}]  }
   0x1   :  { %7 = vsyncpa [#allocation5], 0  ;;  %s175_s6 = smov [#allocation3]   ;;  %s127_s10 = scalar_lea.hbm %s215_s0, 256 }
   0x2   :  { %s14_s7 = sshll.u32 %s175_s6, 4  ;;  %p128_p0 = scmp.ne.s32.totalorder %s215_s0, %s127_s10  ;;  %s15_s7 = int_to_ptr.vmem [resolvable:$true] %s14_s7 }
   0x3   :  { %p131_p1 = scmp.lt.u32.totalorder %s127_s10, %s215_s0 }
   0x5   :  { %p133_p2 = pnand %p131_p1, %p128_p0 }
   0x7   :  { %136 = shalt.err (!%p133_p2)
}
   0x8   :  { %s137_s15 = scalar_lea.vmem %s15_s7, 256  ;;  %p142_p4 = scmp.lt.s32.totalorder %s15_s7, %s15_s7 }
   0x9   :  { %p138_p3 = scmp.ne.s32.totalorder %s15_s7, %s137_s15  ;;  %p143_p5 = scmp.lt.s32.totalorder %s137_s15, %s137_s15 }
   0xb   :  { %p144_p6 = por %p143_p5, %p142_p4 }
   0xd   :  { %p145_p7 = pnand %p144_p6, %p138_p3 }
   0xf   :  { %148 = shalt.err (!%p145_p7)
}
  0x10   :  { %17 = dma.hbm_to_vmem [thread:$0]  %s215_s0, 256, %s15_s7, [#allocation4]  }
  0x11   :  { %171 = dma.done.wait [#allocation4], 256  }
  0x12   :  { %172 = vsyncadd [#allocation4], 4294967040  ;;  %vm25_vm0 = vcmask 64512   ;;  %v176_v0 = vmov 0.0   ;;  %v28_v1 = vld [vmem:[#allocation3 + $0x8] sm:$0xff]  ;;  %v27_v2 = vld [vmem:[#allocation3] sm:$0xff] }
  0x13   :  { %26 = vst.msk [vmem:[#allocation2] sm:$0xff] %vm25_vm0, %v176_v0  ;;  %30 = vmatprep.subr.mxu0 %v28_v1  ;;  %94 = vmatprep.mubr.f32.mxu0 %v28_v1  ;;  %s177_s18 = smov [#allocation6]  }
  0x14   :  { %31 = vmatpush1.xpose.msra.mxu0 %v27_v2  ;;  %s115_s0 = sshll.u32 %s177_s18, 4  ;;  %s116_s0 = int_to_ptr.vmem [resolvable:$true] %s115_s0 }
  0x15   :  { %s149_s19 = scalar_lea.vmem %s116_s0, 128  ;;  %p154_p9 = scmp.lt.s32.totalorder %s116_s0, %s116_s0 }
  0x16   :  { %p150_p8 = scmp.ne.s32.totalorder %s116_s0, %s149_s19  ;;  %p155_p10 = scmp.lt.s32.totalorder %s149_s19, %s149_s19 }
  0x17   :  { %95 = vmatmul.mubr.f32.vlgmr.msra.gmra.mrb[0].mxu0 %v27_v2 }
  0x18   :  { %p156_p11 = por %p155_p10, %p154_p9 }
  0x1a   :  { %v29_v3 = vld [vmem:[#allocation2] sm:$0xff]  ;;  %p157_p12 = pnand %p156_p11, %p150_p8 }
  0xea   :  { %v96_v4 = vpop.f32.mrb[0].mxu0 }
  0xeb   :  { %v100_v5 = vadd.f32 %v96_v4, %v29_v3  ;;  %v98_v6 = vpop.f32.mrb[1].mxu0 }
  0xed   :  { %102 = vst.msk [vmem:[#allocation2] sm:$0xff] %vm25_vm0, %v100_v5 }
  0xf4   :  { %v106_v7 = vld [vmem:[#allocation2] sm:$0xff] }
  0xf5   :  { %v107_v8 = vmul.f32 0.00048828125, %v106_v7 }
  0xf7   :  { %108 = vst.msk [vmem:[#allocation6] sm:$0xff] %vm25_vm0, %v107_v8 }
  0xf8   :  { %160 = shalt.err (!%p157_p12)
}
  0xf9   :  { %s161_s22 = scalar_lea.hbm %s216_s1, 128 }
  0xfa   :  { %p162_p13 = scmp.ne.s32.totalorder %s216_s1, %s161_s22  ;;  %p165_p0 = scmp.lt.u32.totalorder %s161_s22, %s216_s1 }
  0xfc   :  { %p167_p1 = pnand %p165_p0, %p162_p13 }
  0xfe   :  { %170 = shalt.err (!%p167_p1)
}
  0xff   :  { %118 = dma.vmem_to_hbm [thread:$0]  %s116_s0, 128, %s216_s1, [#allocation5]  }
 0x100   :  { %173 = dma.done.wait [#allocation5], 128  }
 0x101   :  { %174 = vsyncadd [#allocation5], 4294967168 }
 0x102   :  { %122 = vsyncpa [#allocation4], 1 }
 0x103   :  { %123 = vsyncpa [#allocation5], 1 }

</bundles_post_ra>
